<compile_context>
chip_gen: v5e
topology: v5e:2x2
jax: 0.10.0
libtpu: 0.0.40
codegen_flags: <defaults>
</compile_context>

<pallas_src>
import jax
import jax.numpy as jnp
import numpy as np
from jax.experimental import pallas as pl
from jax.experimental.pallas import tpu as pltpu

BN_EPS = 1e-5


# ---------------------------------------------------------------------------
# Kernel
# ---------------------------------------------------------------------------
def _deconv_bn_silu_kernel(x_ref, w_ref, shift_ref, o_ref):
    """Fused ConvTranspose2d (k == s) + BatchNorm + SiLU for one (batch, row-tile) block.

    x_ref:     (1, TH*W, C1)        row-flattened NHWC input tile, bf16 (matmul LHS)
    w_ref:     (C1, k*k*C2)         bf16 weight with BN scale folded; columns = (kh, kw, co)
    shift_ref: (1, k*k*C2)          f32 BN shift, tiled over (kh, kw)
    o_ref:     (1, TH, k, W, k*C2)  output viewed as (H, kh, W, kw*C2)
    """
    th = o_ref.shape[1]
    k = o_ref.shape[2]
    w_cols = o_ref.shape[3]
    kc2 = o_ref.shape[4]

    # One wide MXU matmul over all k*k taps (bf16 x bf16 -> f32 accumulate).
    y = jnp.dot(x_ref[0], w_ref[...], preferred_element_type=jnp.float32)  # (TH*W, k*k*C2)
    y = y + shift_ref[0]
    # SiLU: exp and approx reciprocal both live on the EUP slot -> frees the VALU.
    y = y * pl.reciprocal(1.0 + jnp.exp(-y), approx=True)

    # Per-kh slices are lane-contiguous (and 128-aligned whenever k*C2 % 128 == 0, the
    # typical YOLO case); the reshape only splits the sublane-major dim.
    for kh in range(k):  # k is static & tiny -> fully unrolled
        o_ref[0, :, kh, :, :] = (
            y[:, kh * kc2:(kh + 1) * kc2].reshape(th, w_cols, kc2).astype(o_ref.dtype)
        )


# ---------------------------------------------------------------------------
# Tiling heuristic (generation aware)
# ---------------------------------------------------------------------------
def _pick_tile_rows(N, H, W, C1, C2, k, in_bytes, out_bytes):
    """Pick the H row-tile TH (a divisor of H) and the scoped VMEM limit.

    Budgets against the REAL VMEM footprint: double-buffered bf16 input block,
    double-buffered output block, plus the f32 matmul/activation intermediate.
    Keeps the grid at >= ~4 steps when possible so the pipeline has depth and both
    TensorCores get work on v7x.
    """
    try:
        vmem_cap = pltpu.get_tpu_info().vmem_capacity_bytes
    except Exception:  # conservative fallback (v7x-sized VMEM)
        vmem_cap = 64 << 20
    vmem_limit = min((vmem_cap * 3) // 4, 96 << 20)   # 96 MiB on v5e/v6e, 48 MiB on v7x
    budget = (vmem_limit * 2) // 5                    # headroom for weights / compiler temps

    kk = k * k
    per_row = W * (2 * C1 * in_bytes                  # input block, double buffered
                   + kk * C2 * (2 * out_bytes + 4))   # output block x2 + f32 intermediate

    sub = 16 if in_bytes == 2 else 8                  # sublane tile for the (TH*W, C1) block
    cands = [t for t in range(1, H + 1)
             if H % t == 0 and (t == H or (t * W) % sub == 0)]
    fit = [t for t in cands if t * per_row <= budget] or [cands[0]]
    deep = [t for t in fit if N * (H // t) >= 4]      # pipeline depth / v7x dual-TC occupancy
    th = max(deep) if deep else max(fit)
    return th, int(vmem_limit)


# ---------------------------------------------------------------------------
# Wrappers
# ---------------------------------------------------------------------------
def conv_transpose_forward_nhwc(x_nhwc, params, tile_rows=None, out_dtype=None):
    """Preferred entry point: NHWC in / NHWC out, no layout transposes around the kernel."""
    w, shift = params["w"], params["shift"]
    k, s, p, C2 = params["k"], params["s"], params["p"], params["c2"]
    if k != s:
        # TODO(synk): general ConvTranspose2d with k != s (overlapping taps) needs a
        # scatter-add formulation; only the module default k == s is implemented.
        raise NotImplementedError("Pallas ConvTranspose kernel requires k == s")

    N, H, W, C1 = x_nhwc.shape
    kc2 = k * C2
    out_dtype = x_nhwc.dtype if out_dtype is None else out_dtype
    out_bytes = jnp.dtype(out_dtype).itemsize

    th, vmem_limit = _pick_tile_rows(N, H, W, C1, C2, k, in_bytes=2, out_bytes=out_bytes)
    if tile_rows is not None:
        valid = H % tile_rows == 0 and (tile_rows == H or (tile_rows * W) % 16 == 0)
        if valid:
            th = tile_rows
    grid = (N, H // th)

    # bf16 operands for a native-rate MXU matmul (accumulate stays f32 in-kernel).
    x = x_nhwc.astype(jnp.bfloat16).reshape(N, H * W, C1)

    out5 = pl.pallas_call(
        _deconv_bn_silu_kernel,
        out_shape=jax.ShapeDtypeStruct((N, H, k, W, kc2), out_dtype),
        grid=grid,
        in_specs=[
            pl.BlockSpec((1, th * W, C1), lambda n, h: (n, h, 0)),
            pl.BlockSpec((C1, k * kc2), lambda n, h: (0, 0)),
            pl.BlockSpec((1, k * kc2), lambda n, h: (0, 0)),
        ],
        out_specs=pl.BlockSpec((1, th, k, W, kc2), lambda n, h: (n, h, 0, 0, 0)),
        compiler_params=pltpu.CompilerParams(
            dimension_semantics=("parallel", "parallel"),
            vmem_limit_bytes=vmem_limit,
        ),
    )(x, w, shift)

    # (N, H, kh, W, kw*C2) is already the contiguous layout of (N, H*k, W*k, C2): free reshape.
    y = out5.reshape(N, H * k, W * k, C2)
    if p:
        # TODO(synk): fold the p-crop into the output index_map to skip the extra HBM copy.
        y = y[:, p:H * k - p, p:W * k - p, :]
    return y


def conv_transpose_forward(x_nchw, params, tile_rows=None, out_dtype=None):
    """NCHW compatibility wrapper matching the PyTorch module interface.

    NOTE: each transpose here round-trips the (4x larger) output through HBM; prefer
    conv_transpose_forward_nhwc when the surrounding model is NHWC end-to-end.
    """
    x_nhwc = jnp.transpose(x_nchw, (0, 2, 3, 1))
    y = conv_transpose_forward_nhwc(x_nhwc, params, tile_rows=tile_rows, out_dtype=out_dtype)
    return jnp.transpose(y, (0, 3, 1, 2))


# ---------------------------------------------------------------------------
# Deterministic parameter init (mirrors module shapes; eval-mode BN folded)
# ---------------------------------------------------------------------------
def init_convtranspose_params(key, c1, c2, k=2, s=2, p=0):
    assert k == s and 0 <= p < k, "kernel implements the module default k == s, p < k"
    ks = jax.random.split(key, 5)
    # nn.ConvTranspose2d(c1, c2, k, s, p, bias=False) weight shape: (c1, c2, k, k)
    w_t = jax.random.normal(ks[0], (c1, c2, k, k), jnp.float32) * 0.2
    gamma = jax.random.uniform(ks[1], (c2,), jnp.float32, 0.5, 1.5)
    beta = jax.random.normal(ks[2], (c2,), jnp.float32) * 0.1
    mean = jax.random.normal(ks[3], (c2,), jnp.float32) * 0.1
    var = jax.random.uniform(ks[4], (c2,), jnp.float32, 0.5, 1.5)

    scale = gamma / jnp.sqrt(var + BN_EPS)          # eval-mode BN
    shift = beta - mean * scale

    # Fold BN scale into the deconv weight; columns ordered (kh, kw, co) so the fused
    # matmul's per-kh slices are lane-contiguous. Cast to bf16 for the MXU.
    w_folded = (jnp.transpose(w_t, (0, 2, 3, 1)) * scale).reshape(c1, k * k * c2)
    shift_tiled = jnp.tile(shift, k * k).reshape(1, k * k * c2)

    return {
        "w": w_folded.astype(jnp.bfloat16), "shift": shift_tiled,
        "w_t": w_t, "scale": scale, "shift_raw": shift,        # kept for the reference
        "k": k, "s": s, "p": p, "c2": c2,
    }


# ---------------------------------------------------------------------------
# Pure-JAX reference (independent scatter formulation) for correctness check.
# Uses the same bf16 operand rounding as the kernel's MXU path, f32 math otherwise.
# ---------------------------------------------------------------------------
def reference_forward(x_nchw, params):
    w_t, scale, shift = params["w_t"], params["scale"], params["shift_raw"]
    k, p = params["k"], params["p"]
    N, C1, H, W = x_nchw.shape
    C2 = w_t.shape[1]
    xb = x_nchw.astype(jnp.bfloat16).astype(jnp.float32)
    wb = (w_t * scale[None, :, None, None]).astype(jnp.bfloat16).astype(jnp.float32)
    # Transposed conv with k == s: each input pixel scatters a k x k patch (no overlap).
    yk = jnp.einsum("ncij,cokl->noijkl", xb, wb,
                    precision=jax.lax.Precision.HIGHEST)        # (N, C2, H, W, kh, kw)
    yk = jnp.transpose(yk, (0, 1, 2, 4, 3, 5)).reshape(N, C2, H * k, W * k)
    if p:
        yk = yk[:, :, p:H * k - p, p:W * k - p]
    y = yk + shift[None, :, None, None]
    return y * (1.0 / (1.0 + jnp.exp(-y)))                      # SiLU


if __name__ == "__main__":
    key = jax.random.PRNGKey(0)
    kx, kp = jax.random.split(key)

    N, C1, C2, H, W, K, S, P = 2, 4, 8, 16, 16, 2, 2, 0
    x = jax.random.normal(kx, (N, C1, H, W), jnp.float32)
    params = init_convtranspose_params(kp, C1, C2, K, S, P)

    ref = jax.block_until_ready(reference_forward(x, params))   # NCHW f32 reference

    # NCHW compatibility path, explicit multi-tile grid (2, 4), f32 output.
    out = jax.block_until_ready(conv_transpose_forward(x, params, tile_rows=4))
    assert out.shape == (N, C2, H * S - 2 * P, W * S - 2 * P)
    np.testing.assert_allclose(np.asarray(out), np.asarray(ref), rtol=1e-2, atol=1e-2)

    # NHWC-native path (no wrapper transposes), auto-picked tile, bf16 output.
    x_nhwc = jnp.transpose(x, (0, 2, 3, 1))
    out_nhwc = jax.block_until_ready(
        conv_transpose_forward_nhwc(x_nhwc, params, out_dtype=jnp.bfloat16))
    ref_nhwc = np.transpose(np.asarray(ref), (0, 2, 3, 1))
    np.testing.assert_allclose(np.asarray(out_nhwc).astype(np.float32), ref_nhwc,
                               rtol=1e-2, atol=1e-2)

    print("KERNEL_OK")
</pallas_src>

<mosaic_0001>
module attributes {stable_mosaic.version = 11 : i64} {
  func.func @_deconv_bn_silu_kernel(%arg0: i32, %arg1: i32, %arg2: memref<1x64x4xbf16, #tpu.memory_space<vmem>>, %arg3: memref<4x32xbf16, #tpu.memory_space<vmem>>, %arg4: memref<1x32xf32, #tpu.memory_space<vmem>>, %arg5: memref<1x4x2x16x16xf32, #tpu.memory_space<vmem>>) attributes {dimension_semantics = [#tpu.dimension_semantics<parallel>, #tpu.dimension_semantics<parallel>], iteration_bounds = array<i64: 2, 4>, scalar_prefetch = 0 : i64, scratch_operands = 0 : i64, tpu.core_type = #tpu.core_type<tc>, window_params = [{transform_indices = @transform_0, window_bounds = array<i64: 1, 64, 4>}, {pipeline_mode = #tpu.pipeline_mode<synchronous>, transform_indices = @transform_1, window_bounds = array<i64: 4, 32>}, {pipeline_mode = #tpu.pipeline_mode<synchronous>, transform_indices = @transform_2, window_bounds = array<i64: 1, 32>}, {transform_indices = @transform_3, window_bounds = array<i64: 1, 4, 2, 16, 16>}]} {
    %c0 = arith.constant 0 : index
    %c0_0 = arith.constant 0 : index
    %c0_1 = arith.constant 0 : index
    %0 = vector.load %arg2[%c0, %c0_0, %c0_1] : memref<1x64x4xbf16, #tpu.memory_space<vmem>>, vector<1x64x4xbf16>
    %1 = vector.shape_cast %0 : vector<1x64x4xbf16> to vector<64x4xbf16>
    %c0_2 = arith.constant 0 : index
    %c0_3 = arith.constant 0 : index
    %2 = vector.load %arg3[%c0_2, %c0_3] : memref<4x32xbf16, #tpu.memory_space<vmem>>, vector<4x32xbf16>
    %cst = arith.constant dense<0.000000e+00> : vector<64x32xf32>
    %3 = tpu.matmul %1, %2, %cst {dimension_numbers = #tpu.dot_dimension_numbers<[1], [0], [0], [1], [0, 0, 1, 1], [], []>} : vector<64x4xbf16>, vector<4x32xbf16>, vector<64x32xf32> -> vector<64x32xf32>
    %c0_4 = arith.constant 0 : index
    %c0_5 = arith.constant 0 : index
    %4 = vector.load %arg4[%c0_4, %c0_5] : memref<1x32xf32, #tpu.memory_space<vmem>>, vector<1x32xf32>
    %5 = vector.shape_cast %4 : vector<1x32xf32> to vector<32xf32>
    %6 = vector.shape_cast %5 : vector<32xf32> to vector<1x32xf32>
    %7 = vector.broadcast %6 : vector<1x32xf32> to vector<64x32xf32>
    %8 = arith.addf %3, %7 : vector<64x32xf32>
    %cst_6 = arith.constant 0.000000e+00 : f32
    %9 = vector.broadcast %cst_6 : f32 to vector<64x32xf32>
    %10 = arith.subf %9, %8 : vector<64x32xf32>
    %11 = math.exp %10 : vector<64x32xf32>
    %cst_7 = arith.constant 1.000000e+00 : f32
    %12 = vector.broadcast %cst_7 : f32 to vector<64x32xf32>
    %13 = arith.addf %12, %11 : vector<64x32xf32>
    %14 = tpu.reciprocal %13 {approx = true} : vector<64x32xf32> -> vector<64x32xf32>
    %15 = arith.mulf %8, %14 : vector<64x32xf32>
    %16 = vector.extract_strided_slice %15 {offsets = [0, 0], sizes = [64, 16], strides = [1, 1]} : vector<64x32xf32> to vector<64x16xf32>
    %17 = vector.shape_cast %16 : vector<64x16xf32> to vector<4x16x16xf32>
    %c0_8 = arith.constant 0 : index
    %c0_9 = arith.constant 0 : index
    %c0_10 = arith.constant 0 : index
    %c0_11 = arith.constant 0 : index
    %c0_12 = arith.constant 0 : index
    %18 = vector.load %arg5[%c0_8, %c0_9, %c0_10, %c0_11, %c0_12] : memref<1x4x2x16x16xf32, #tpu.memory_space<vmem>>, vector<1x4x1x16x16xf32>
    %19 = vector.shape_cast %18 : vector<1x4x1x16x16xf32> to vector<4x16x16xf32>
    %20 = vector.shape_cast %17 : vector<4x16x16xf32> to vector<1x4x1x16x16xf32>
    tpu.vector_store %arg5[%c0_8, %c0_9, %c0_10, %c0_11, %c0_12], %20 {strides = array<i32>} : memref<1x4x2x16x16xf32, #tpu.memory_space<vmem>>, vector<1x4x1x16x16xf32>,
    %21 = vector.extract_strided_slice %15 {offsets = [0, 16], sizes = [64, 16], strides = [1, 1]} : vector<64x32xf32> to vector<64x16xf32>
    %22 = vector.shape_cast %21 : vector<64x16xf32> to vector<4x16x16xf32>
    %c0_13 = arith.constant 0 : index
    %c0_14 = arith.constant 0 : index
    %c1 = arith.constant 1 : index
    %c0_15 = arith.constant 0 : index
    %c0_16 = arith.constant 0 : index
    %23 = vector.load %arg5[%c0_13, %c0_14, %c1, %c0_15, %c0_16] : memref<1x4x2x16x16xf32, #tpu.memory_space<vmem>>, vector<1x4x1x16x16xf32>
    %24 = vector.shape_cast %23 : vector<1x4x1x16x16xf32> to vector<4x16x16xf32>
    %25 = vector.shape_cast %22 : vector<4x16x16xf32> to vector<1x4x1x16x16xf32>
    tpu.vector_store %arg5[%c0_13, %c0_14, %c1, %c0_15, %c0_16], %25 {strides = array<i32>} : memref<1x4x2x16x16xf32, #tpu.memory_space<vmem>>, vector<1x4x1x16x16xf32>,
    return
  }
  func.func @transform_0(%arg0: i32, %arg1: i32) -> (i32, i32, i32) {
    %c0_i32 = arith.constant 0 : i32
    %c0_i32_0 = arith.constant 0 : i32
    return %arg0, %arg1, %c0_i32 : i32, i32, i32
  }
  func.func @transform_1(%arg0: i32, %arg1: i32) -> (i32, i32) {
    %c0_i32 = arith.constant 0 : i32
    %c0_i32_0 = arith.constant 0 : i32
    %c0_i32_1 = arith.constant 0 : i32
    return %c0_i32, %c0_i32_0 : i32, i32
  }
  func.func @transform_2(%arg0: i32, %arg1: i32) -> (i32, i32) {
    %c0_i32 = arith.constant 0 : i32
    %c0_i32_0 = arith.constant 0 : i32
    %c0_i32_1 = arith.constant 0 : i32
    return %c0_i32, %c0_i32_0 : i32, i32
  }
  func.func @transform_3(%arg0: i32, %arg1: i32) -> (i32, i32, i32, i32, i32) {
    %c0_i32 = arith.constant 0 : i32
    %c0_i32_0 = arith.constant 0 : i32
    %c0_i32_1 = arith.constant 0 : i32
    %c0_i32_2 = arith.constant 0 : i32
    return %arg0, %arg1, %c0_i32, %c0_i32_0, %c0_i32_1 : i32, i32, i32, i32, i32
  }
}

</mosaic_0001>

<bundles_post_ra>
// kernel: tpu_custom_call.1
= control target key start
LH: loop header
LB: loop body
LE: loop exit
PB: predicated region body
PF: predicated region fallthrough
CT: control target
= control target key end

     0   :  { %8 = vsyncpa [#allocation3], 0  ;;  %s947_s0 = inlined_call_operand.vmem [shape: bf16[2,256,4], index: 0, kind: input, shape index: {}]   ;;  %s948_s1 = inlined_call_operand.vmem [shape: bf16[4,32], index: 1, kind: input, shape index: {}]   ;;  %s949_s2 = inlined_call_operand.vmem [shape: f32[1,32], index: 2, kind: input, shape index: {}]   ;;  %s950_s3 = inlined_call_operand.hbm [shape: f32[2,16,2,16,16], index: 3, kind: output, shape index: {}]  }
   0x1   :  { %10 = vsyncpa [#allocation3 + $0x1], 0  ;;  %s757_s12 = smov 0   ;;  %s759_s13 = smov 0  }
   0x2   :  { %s761_s14 = smov 0   ;;  %s763_s15 = smov 0  }
   0x3   :  { %s765_s16 = smov 0   ;;  %s767_s17 = smov 0  }
   0x4   :  { %s769_s18 = smov 0   ;;  %s771_s19 = smov 0  }
   0x5 LB: > { %s479_s20 = sadd.s32 4294967295, %s732_s19   ;;  %s480_s21 = sadd.s32 4294967294, %s732_s19   ;;  %s732_s19 = sphi %s771_s19, %s16_s19   ;;  %s728_s18 = sphi %s769_s18, %s959_s18   ;;  %s724_s17 = sphi %s767_s17, %s958_s17   ;;  %s720_s16 = sphi %s765_s16, %s957_s16   ;;  %s716_s15 = sphi %s763_s15, %s956_s15   ;;  %s712_s14 = sphi %s761_s14, %s955_s14   ;;  %s708_s13 = sphi %s759_s13, %s954_s13   ;;  %s704_s12 = sphi %s757_s12, %s953_s12  }
   0x6   : > { %s25_s22 = sadd.s32 1, %s724_s17  ;;  %s28_s23 = sadd.s32 1, %s728_s18 }
   0x7   : > { %p26_p0 = scmp.ge.s32.totalorder %s25_s22, 4  ;;  %p117_p1 = scmp.ne.s32.totalorder %s712_s14, %s708_s13 }
   0x8   : > { %p118_p2 = scmp.eq.s32.totalorder %s479_s20, 7  ;;  %p123_p5 = scmp.ne.s32.totalorder %s708_s13, %s704_s12 }
   0x9   : > { %s961_s22 = smov (%p26_p0, %s25_s22), 0  ;;  %s963_s23 = smov (!%p26_p0, %s28_s23), %s728_s18 }
   0xa   : > { %s103_s24 = ssub.s32 %s724_s17, %s961_s22  ;;  %p808_p3 = por %p118_p2, %p117_p1 }
   0xb   : > { %p30_p4 = scmp.ge.s32.totalorder %s963_s23, 2  ;;  %p124_p6 = scmp.eq.s32.totalorder %s480_s21, 7 }
   0xc   : > { %p483_p7 = scmp.ge.s32.totalorder %s732_s19, 1  ;;  %p161_p9 = scmp.lt.s32.totalorder %s732_s19, 9 }
   0xd   : > { %s965_s23 = smov (%p30_p4, %s963_s23), 0  ;;  %p817_p8 = por %p124_p6, %p123_p5 }
   0xe   : > { %s102_s27 = ssub.s32 %s728_s18, %s965_s23  ;;  %s107_s28 = sadd.s32 1, %s712_s14 }
   0xf   : > { %s104_s29 = sor.u32 %s103_s24, %s102_s27  ;;  %p162_p10 = pnand %p483_p7, %p161_p9 }
  0x10   : > { %p105_p11 = scmp.eq.s32.totalorder %s104_s29, 0  ;;  %s485_s6 = sshll.u32 (!%p162_p10), %s716_s15, 3 }
  0x11   : > { %165 = sbr.rel (%p162_p10) target bundleno = 318 (0x13e), region = 32  ;;  %p190_p12 = scmp.lt.s32.totalorder (!%p162_p10), %s720_s16, 1 }
  0x12   : > { %s826_s30 = scalar_select %p105_p11, %s712_s14, %s107_s28  }
  0x13   : > { %p192_p13 = scmp.lt.s32.totalorder (!%p162_p10), %s485_s6, 31  ;;  %s186_s28 = sand.u32 (!%p162_p10), 1, %s708_s13  }
  0x14   : > { %s484_s29 = sshll.u32 (!%p162_p10), %s186_s28, 7  ;;  %s734_s4 = smov (!%p162_p10), 112  }
  0x15   : > { %s856_s5 = scalar_lea.vmem (!%p162_p10), [#allocation2], %s484_s29 }
  0x16   : > { %v209_v0 = vld [vmem:[%s948_s1] sm:$0x3]  ;;  %vm247_vm0 = vcmask 1041408   ;;  %s191_s7 = scalar_select %p190_p12, %s720_s16, 1  ;;  %vm234_vm1 = vcmask 31744   ;;  %vm328_vm2 = vcmask 130048  }
  0x17   : > { %v249_v1 = vsel %vm247_vm0, %v209_v0, 0  ;;  %s967_s6 = smov (!%p192_p13, %s485_s6), 31  ;;  %v605_v6 = vld [vmem:[%s949_s2] ss:$0 sm:$0xff] }
  0x18   : > { %258 = vmatpush.bf16.msra.mxu0 %v249_v1  ;;  %528 = vmatpush.bf16.msra.mxu1 %v249_v1  ;;  %s486_s8 = sshll.u32 %s191_s7, 5  ;;  %s519_s7 = sshll.u32 %s720_s16, 6 }
  0x19   : > { %529 = vmatpush.bf16.msra.mxu2 %v249_v1  ;;  %530 = vmatpush.bf16.msra.mxu3 %v249_v1  ;;  %s195_s9 = sadd.s32 %s486_s8, %s967_s6  ;;  %s527_s6 = sshll.u32 %s716_s15, 4 }
  0x1a   : > { %s487_s10 = sshll.u32 %s195_s9, 2  ;;  %s391_s8 = sadd.s32 %s527_s6, %s519_s7 }
  0x1b   : > { %s197_s21 = scalar_lea.vmem %s947_s0, %s487_s10  ;;  %s520_s9 = sshll.u32 %s391_s8, 3 }
  0x1c   : > { %v523_v2 = vld [vmem:[%s197_s21] sm:$0xff]  ;;  %v524_v3 = vld [vmem:[%s197_s21 + $0x8] sm:$0xff]  ;;  %v525_v4 = vld [vmem:[%s197_s21 + $0x10] sm:$0xff]  ;;  %s393_s20 = scalar_lea.hbm %s950_s3, %s520_s9  ;;  %s379_s15 = scalar_lea.sflag [#allocation3], %s186_s28 }
  0x1d   : > { %v526_v5 = vld [vmem:[%s197_s21 + $0x18] sm:$0xff]  ;;  %504 = vmatmul.msk.bf16.vlgmr.msra.gmra.mxu0 %vm234_vm1, %v523_v2  ;;  %505 = vmatmul.msk.bf16.vlgmr.msra.gmra.mxu1 %vm234_vm1, %v524_v3  ;;  %s394_s21 = sshll.u32 %s856_s5, 4  ;;  %s396_s24 = sshll.u32 %s393_s20, 4  ;;  %s395_s21 = int_to_ptr.vmem [resolvable:$true] %s394_s21  ;;  %s397_s24 = int_to_ptr.hbm [resolvable:$true] %s396_s24 }
  0x1e   : > { %506 = vmatmul.msk.bf16.vlgmr.msra.gmra.mxu2 %vm234_vm1, %v525_v4  ;;  %507 = vmatmul.msk.bf16.vlgmr.msra.gmra.mxu3 %vm234_vm1, %v526_v5  ;;  %s652_s16 = sshra.s32 %s397_s24, 4  ;;  %s658_s6 = scalar_lea.hbm %s950_s3, 1024  ;;  %s653_s16 = int_to_ptr.hbm [resolvable:$true] %s652_s16 }
  0x1f   : > { %s654_s27 = scalar_lea.hbm %s653_s16, 128  ;;  %p659_p4 = scmp.lt.s32.totalorder %s653_s16, %s950_s3 }
  0x20   : > { %p655_p0 = scmp.ne.s32.totalorder %s653_s16, %s654_s27  ;;  %p660_p5 = scmp.lt.s32.totalorder %s658_s6, %s654_s27 }
  0x22   : > { %p656_p1 = pnand %p655_p0, %p808_p3  ;;  %p661_p6 = por %p660_p5, %p659_p4 }
  0x24   : > { %p657_p2 = pneg %p656_p1 }
  0x26   : > { %p662_p7 = pnand %p661_p6, %p657_p2 }
  0x9a   : > { %v260_v7 = vpop.f32.mrf.mxu0  ;;  %v265_v8 = vpop.f32.mrf.mxu1 }
  0x9b   : > { %v261_v9 = vadd.f32 %v605_v6, %v260_v7  ;;  %v266_v10 = vadd.f32 %v605_v6, %v265_v8 }
  0x9d   : > { %v280_v11 = vsub.f32 0.0, %v261_v9  ;;  %v282_v12 = vsub.f32 0.0, %v266_v10 }
  0x9f   : > { %v288_v13 = vmul.f32 1.442695, %v280_v11  ;;  %v292_v14 = vmul.f32 1.442695, %v282_v12 }
  0xa1   : > { %606 = vpow2.f32 %v288_v13  ;;  %v270_v15 = vpop.f32.mrf.mxu2  ;;  %v275_v16 = vpop.f32.mrf.mxu3 }
  0xa2   : > { %608 = vpow2.f32 %v292_v14  ;;  %v840_v17 = vadd.f32 %v605_v6, %v270_v15  ;;  %v842_v18 = vadd.f32 %v605_v6, %v275_v16  ;;  %v262_v19 = vpop.f32.mrf.mxu0  ;;  %v267_v20 = vpop.f32.mrf.mxu1 }
  0xa3   : > { %v844_v21 = vadd.f32 %v605_v6, %v262_v19  ;;  %v846_v22 = vadd.f32 %v605_v6, %v267_v20 }
  0xa4   : > { %v284_v23 = vsub.f32 0.0, %v840_v17  ;;  %v286_v24 = vsub.f32 0.0, %v842_v18 }
  0xa5   : > { %v281_v25 = vsub.f32 0.0, %v844_v21  ;;  %v283_v26 = vsub.f32 0.0, %v846_v22 }
  0xa6   : > { %v296_v27 = vmul.f32 1.442695, %v284_v23  ;;  %v300_v28 = vmul.f32 1.442695, %v286_v24 }
  0xa7   : > { %v607_v29 = vpop.eup %606  ;;  %v290_v32 = vmul.f32 1.442695, %v281_v25  ;;  %v294_v34 = vmul.f32 1.442695, %v283_v26 }
  0xa8   : > { %v609_v30 = vpop.eup %608  ;;  %v304_v31 = vadd.f32 1.0, %v607_v29  ;;  %610 = vpow2.f32 %v296_v27 }
  0xa9   : > { %v306_v33 = vadd.f32 1.0, %v609_v30  ;;  %612 = vpow2.f32 %v300_v28  ;;  %v272_v35 = vpop.f32.mrf.mxu2  ;;  %v277_v36 = vpop.f32.mrf.mxu3 }
  0xaa   : > { %614 = vrcp.f32 %v304_v31  ;;  %v273_v37 = vadd.f32 %v605_v6, %v272_v35  ;;  %v278_v38 = vadd.f32 %v605_v6, %v277_v36 }
  0xab   : > { %616 = vrcp.f32 %v306_v33 }
  0xac   : > { %618 = vpow2.f32 %v290_v32  ;;  %v285_v39 = vsub.f32 0.0, %v273_v37  ;;  %v287_v40 = vsub.f32 0.0, %v278_v38 }
  0xad   : > { %620 = vpow2.f32 %v294_v34 }
  0xae   : > { %v611_v41 = vpop.eup %610  ;;  %v298_v42 = vmul.f32 1.442695, %v285_v39  ;;  %v302_v45 = vmul.f32 1.442695, %v287_v40 }
  0xaf   : > { %v613_v43 = vpop.eup %612  ;;  %v308_v44 = vadd.f32 1.0, %v611_v41 }
  0xb0   : > { %v615_v46 = vpop.eup %614  ;;  %v310_v47 = vadd.f32 1.0, %v613_v43  ;;  %622 = vpow2.f32 %v298_v42 }
  0xb1   : > { %v617_v48 = vpop.eup %616  ;;  %624 = vrcp.f32 %v308_v44  ;;  %v320_v49 = vmul.f32 %v615_v46, %v261_v9 }
  0xb2   : > { %v619_v50 = vpop.eup %618  ;;  %626 = vrcp.f32 %v310_v47  ;;  %v322_v51 = vmul.f32 %v617_v48, %v266_v10 }
  0xb3   : > { %v621_v52 = vpop.eup %620  ;;  %v305_v53 = vadd.f32 1.0, %v619_v50  ;;  %628 = vpow2.f32 %v302_v45  ;;  %345 = vrot.lane.b32.xlu0 %v320_v49, %s734_s4  ;;  %329 = vst.msk [vmem:[%s856_s5] sm:$0xff] %vm328_vm2, %v320_v49 }
  0xb4   : > { %v307_v54 = vadd.f32 1.0, %v621_v52  ;;  %349 = vrot.lane.b32.xlu1 %v322_v51, %s734_s4  ;;  %331 = vst.msk [vmem:[%s856_s5 + $0x20] sm:$0xff] %vm328_vm2, %v322_v51 }
  0xb5   : > { %630 = vrcp.f32 %v305_v53 }
  0xb6   : > { %v623_v55 = vpop.eup %622  ;;  %632 = vrcp.f32 %v307_v54 }
  0xb7   : > { %v625_v56 = vpop.eup %624  ;;  %v309_v57 = vadd.f32 1.0, %v623_v55 }
  0xb8   : > { %v627_v58 = vpop.eup %626  ;;  %v324_v59 = vmul.f32 %v625_v56, %v840_v17 }
  0xb9   : > { %v629_v60 = vpop.eup %628  ;;  %v326_v61 = vmul.f32 %v627_v58, %v842_v18  ;;  %634 = vrcp.f32 %v309_v57 }
  0xba   : > { %v311_v62 = vadd.f32 1.0, %v629_v60  ;;  %353 = vrot.lane.b32.xlu2 %v324_v59, %s734_s4  ;;  %333 = vst.msk [vmem:[%s856_s5 + $0x40] sm:$0xff] %vm328_vm2, %v324_v59 }
  0xbb   : > { %v631_v63 = vpop.eup %630  ;;  %335 = vst.msk [vmem:[%s856_s5 + $0x60] sm:$0xff] %vm328_vm2, %v326_v61 }
  0xbc   : > { %v633_v0 = vpop.eup %632  ;;  %v321_v1 = vmul.f32 %v631_v63, %v844_v21  ;;  %636 = vrcp.f32 %v311_v62 }
  0xbd   : > { %v323_v2 = vmul.f32 %v633_v0, %v846_v22 }
  0xbe   : > { %330 = vst.msk [vmem:[%s856_s5 + $0x8] sm:$0xff] %vm328_vm2, %v321_v1  ;;  %347 = vrot.lane.b32.xlu0 %v321_v1, %s734_s4 }
  0xbf   : > { %v635_v3 = vpop.eup %634  ;;  %332 = vst.msk [vmem:[%s856_s5 + $0x28] sm:$0xff] %vm328_vm2, %v323_v2  ;;  %351 = vrot.lane.b32.xlu1 %v323_v2, %s734_s4 }
  0xc0   : > { %v325_v4 = vmul.f32 %v635_v3, %v273_v37 }
  0xc2   : > { %v637_v5 = vpop.eup %636  ;;  %334 = vst.msk [vmem:[%s856_s5 + $0x48] sm:$0xff] %vm328_vm2, %v325_v4  ;;  %355 = vrot.lane.b32.xlu2 %v325_v4, %s734_s4 }
  0xc3   : > { %v327_v6 = vmul.f32 %v637_v5, %v278_v38 }
  0xc5   : > { %336 = vst.msk [vmem:[%s856_s5 + $0x68] sm:$0xff] %vm328_vm2, %v327_v6 }
  0xc6   : > { %357 = vrot.lane.b32.xlu0 %v326_v61, %s734_s4 }
  0xc7   : > { %359 = vrot.lane.b32.xlu1 %v327_v6, %s734_s4 }
 0x114   : > { %v354_v7 = vpop.permute.xlu2 %353 }
 0x115   : > { %512 = vst.msk [vmem:[%s856_s5 + $0x50] sm:$0xff] %vm328_vm2, %v354_v7 }
 0x11c   : > { %v356_v8 = vpop.permute.xlu2 %355 }
 0x11d   : > { %513 = vst.msk [vmem:[%s856_s5 + $0x58] sm:$0xff] %vm328_vm2, %v356_v8 }
 0x125   : > { %v346_v9 = vpop.permute.xlu0 %345 }
 0x126   : > { %v350_v10 = vpop.permute.xlu1 %349  ;;  %508 = vst.msk [vmem:[%s856_s5 + $0x10] sm:$0xff] %vm328_vm2, %v346_v9 }
 0x127   : > { %510 = vst.msk [vmem:[%s856_s5 + $0x30] sm:$0xff] %vm328_vm2, %v350_v10 }
 0x130   : > { %v348_v11 = vpop.permute.xlu0 %347 }
 0x131   : > { %v352_v12 = vpop.permute.xlu1 %351  ;;  %509 = vst.msk [vmem:[%s856_s5 + $0x18] sm:$0xff] %vm328_vm2, %v348_v11 }
 0x132   : > { %511 = vst.msk [vmem:[%s856_s5 + $0x38] sm:$0xff] %vm328_vm2, %v352_v12 }
 0x138   : > { %v358_v13 = vpop.permute.xlu0 %357 }
 0x139   : > { %v360_v14 = vpop.permute.xlu1 %359  ;;  %514 = vst.msk [vmem:[%s856_s5 + $0x70] sm:$0xff] %vm328_vm2, %v358_v13 }
 0x13a   : > { %515 = vst.msk [vmem:[%s856_s5 + $0x78] sm:$0xff] %vm328_vm2, %v360_v14 }
 0x13b   : > { %665 = shalt.err (!%p662_p7)
}
 0x13c   : > { %s735_s28 = smov 128   ;;  %s736_s5 = smov 8  }
 0x13d   : > { %531 = dma.vmem_to_hbm [thread:$0]  (%p808_p3), %s395_s21, 2048, %s397_s24, %s379_s15, %s735_s28, %s735_s28, %s736_s5  }
 0x13e PF: > { %p537_p9 = scmp.ge.s32.totalorder %s732_s19, 2  ;;  %s411_s9 = sand.u32 1, %s704_s12  }
 0x13f   : > { %s412_s10 = scalar_lea.sflag [#allocation3], %s411_s9 }
 0x140   : > { %p534_p10 = pnand %p537_p9, %p817_p8 }
 0x142   : > { %p535_p11 = pneg %p534_p10 }
 0x144   : > { %699 = dma.done.wait (%p535_p11), %s412_s10, 2048  }
 0x145   : > { %701 = vsyncadd (%p535_p11), %s412_s10, 4294965248  ;;  %s16_s19 = sadd.s32 1, %s732_s19   ;;  %s953_s12 = smov %s708_s13 }
 0x146   : > { %p13_p12 = scmp.ge.s32.totalorder %s16_s19, 10   ;;  %s954_s13 = smov %s712_s14 }
 0x147   : > { %s955_s14 = smov %s826_s30  ;;  %s956_s15 = smov %s724_s17 }
 0x148   : > { %s957_s16 = smov %s728_s18  ;;  %s958_s17 = smov %s961_s22 }
 0x149   : > { %s959_s18 = smov %s965_s23  ;;  %15 = sbr.rel (!%p13_p12) target bundleno = 5 (0x5), region = 68 }
 0x14e   :  { %418 = vsyncpa [#allocation3], 1 }
 0x14f   :  { %420 = vsyncpa [#allocation3 + $0x1], 1 }

</bundles_post_ra>
